<compile_context>
chip_gen: v6e
topology: v6e:2x2x1
jax: 0.10.0
libtpu: 0.0.40
codegen_flags: <defaults>
</compile_context>

<pallas_src>
import math

import jax
import jax.numpy as jnp
from jax.experimental import pallas as pl
from jax.experimental.pallas import tpu as pltpu


def _round_up(x, m):
    return ((x + m - 1) // m) * m


def _detect_pipeline_mode():
    if not hasattr(pl, "Buffered"):
        return False
    try:
        pl.BlockSpec((8, 128), lambda i: (0, 0), pipeline_mode=pl.Buffered(1))
        return True
    except TypeError:
        return False


_HAS_PIPELINE_MODE = _detect_pipeline_mode()


def _vmem_budget():
    """Generation-aware VMEM budget: ~75% of physical (≈48 MiB v7x, ≈96 MiB v5e/v6e)."""
    try:
        cap = int(pltpu.get_tpu_info().vmem_capacity_bytes)
    except Exception:
        cap = 64 * 1024 * 1024  # conservative fallback (v7x per-TC size)
    return max(32 * 1024 * 1024, (cap * 3) // 4)


def _choose_tiles(M, D_pad, H_pad, O, isz, budget, single_w1):
    """Pick (row tile tm, hidden tile th, padded row count M_pad) under the VMEM budget.

    Counts everything resident in VMEM: 2x-buffered x tile, the W1 chunk
    (1x or 2x buffered), the f32 tanh intermediate (tm*th*4), bias/w2, the f32
    accumulator scratch and the (2x-buffered) output tile, plus slack.
    """
    M8 = _round_up(max(M, 1), 8)
    O_lane = _round_up(max(O, 1), 128)

    def per_th(tm, wbuf):
        w2_b = 2 * 8 * isz if O == 1 else 2 * O_lane * isz          # w2 chunk
        return wbuf * D_pad * isz + tm * 4 + 2 * 8 * isz + w2_b     # W1 + h(f32) + b1 + w2

    def fixed(tm):
        acc_b = tm * (128 if O == 1 else O_lane) * 4                # f32 accumulator scratch
        out_b = 2 * max(8, O) * tm * isz                            # output tile (2 bufs)
        return 2 * tm * D_pad * isz + acc_b + out_b + (2 << 20)     # x tile (2 bufs) + slack

    # Row tile: big enough to amortize the ~0.35us/step grid overhead, capped so
    # zero-row padding waste stays small and so >=2 row tiles exist for the v7x
    # megacore split when M is large enough.
    if M8 <= 512:
        tm = M8
    else:
        tm = min(512, _round_up(pl.cdiv(M8, 2), 128))

    wbuf1 = 1 if single_w1 else 2
    while True:
        if fixed(tm) + H_pad * per_th(tm, wbuf1) <= budget:
            th = H_pad                                              # whole hidden dim resident
            break
        avail = budget - fixed(tm)
        th_fit = (avail // per_th(tm, 2)) // 128 * 128 if avail > 0 else 0
        if th_fit >= 128:
            n_h = pl.cdiv(H_pad, th_fit)
            th = _round_up(pl.cdiv(H_pad, n_h), 128)                # near-even 128-aligned chunks
            break
        if tm <= 128:
            th = 128                                                # best effort for extreme D/H
            break
        tm = max(128, (tm // 2) // 128 * 128)

    if tm >= M8:
        tm, M_pad = M8, M8
    else:
        M_pad = _round_up(M, tm)
    return tm, th, M_pad


def _additive_kernel_vec(x_ref, w1_ref, b1_ref, w2_ref, o_ref, acc_ref):
    """output_size == 1 path.  Accumulates over hidden chunks; lane-dense (1, tm) store."""
    k = pl.program_id(1)

    @pl.when(k == 0)
    def _():
        acc_ref[...] = jnp.zeros_like(acc_ref)

    h = jnp.tanh(
        jnp.dot(x_ref[...], w1_ref[...], preferred_element_type=jnp.float32)
        + b1_ref[...].astype(jnp.float32)
    )
    # Width-1 output: VPU broadcast-multiply + XLU lane reduce instead of a
    # 1-column MXU pass; accumulate the partial hidden-chunk sums in f32.
    acc_ref[...] += jnp.sum(h * w2_ref[...].astype(jnp.float32), axis=-1, keepdims=True)

    @pl.when(k == pl.num_programs(1) - 1)
    def _():
        # (tm,1) column -> lane-dense (1,tm) row so the output store is unmasked.
        o_ref[...] = jnp.transpose(acc_ref[...]).astype(o_ref.dtype)


def _additive_kernel_mat(x_ref, w1_ref, b1_ref, w2_ref, o_ref, acc_ref):
    """output_size > 1 path: second matmul on the MXU, accumulated over hidden chunks."""
    k = pl.program_id(1)

    @pl.when(k == 0)
    def _():
        acc_ref[...] = jnp.zeros_like(acc_ref)

    h = jnp.tanh(
        jnp.dot(x_ref[...], w1_ref[...], preferred_element_type=jnp.float32)
        + b1_ref[...].astype(jnp.float32)
    )
    # Cast h back to the parameter dtype so the second dot is a native MXU pass
    # (tanh output is in [-1,1], bf16-safe); accumulate in f32.
    acc_ref[...] += jnp.dot(h.astype(w2_ref.dtype), w2_ref[...],
                            preferred_element_type=jnp.float32)

    @pl.when(k == pl.num_programs(1) - 1)
    def _():
        # TODO(synk): for small O a lane-dense (O, tm) transposed store would avoid
        # masked partial stores; kept direct to keep lowering simple/robust.
        o_ref[...] = acc_ref[...].astype(o_ref.dtype)


def uni_additive_similarity(tensor_1, w1, b1, w2, *, out_dtype=None):
    """tensor_1: (..., D); w1: (H, D) torch layout; b1: (H,); w2: (O, H) torch layout."""
    *lead, D = tensor_1.shape
    H = w1.shape[0]
    O = w2.shape[0]
    out_dtype = tensor_1.dtype if out_dtype is None else out_dtype
    M = math.prod(lead) if lead else 1
    isz = jnp.dtype(tensor_1.dtype).itemsize

    D_pad = _round_up(D, 128)
    H_pad0 = _round_up(H, 128)
    budget = int(_vmem_budget())
    # Only bother single-buffering W1 when it is big enough to matter (>= 1 MiB).
    single_w1 = _HAS_PIPELINE_MODE and D_pad * H_pad0 * isz >= (1 << 20)

    tm, th, M_pad = _choose_tiles(M, D_pad, H_pad0, O, isz, budget, single_w1)
    H_pad = _round_up(H_pad0, th)
    n_row, n_h = M_pad // tm, H_pad // th

    # Pad everything to full (8,128)-aligned tiles: unmasked loads, full MXU tiles.
    x2d = tensor_1.reshape(M, D)
    if M_pad != M or D_pad != D:
        x2d = jnp.pad(x2d, ((0, M_pad - M), (0, D_pad - D)))
    w1_t = jnp.transpose(w1)                                        # (D, H), transposed once
    if D_pad != D or H_pad != H:
        w1_t = jnp.pad(w1_t, ((0, D_pad - D), (0, H_pad - H)))
    b1_2d = b1.reshape(1, H)
    if H_pad != H:
        b1_2d = jnp.pad(b1_2d, ((0, 0), (0, H_pad - H)))

    def w1_spec():
        idx = lambda i, k: (0, k)
        if single_w1 and n_h == 1:
            # W1 never changes across the grid -> single buffer (halves its VMEM footprint).
            return pl.BlockSpec((D_pad, th), idx, pipeline_mode=pl.Buffered(1))
        return pl.BlockSpec((D_pad, th), idx)

    cost = pl.CostEstimate(
        flops=2 * M_pad * H_pad * (D_pad + O),
        transcendentals=M_pad * H_pad,
        bytes_accessed=(M_pad * D_pad
                        + D_pad * H_pad * (n_row if n_h > 1 else 1)
                        + H_pad * (1 + O)
                        + M_pad * max(O, 1)) * isz,
    )
    cparams = pltpu.CompilerParams(
        dimension_semantics=("parallel", "arbitrary"),  # row tiles over TCs; H is a reduction
        vmem_limit_bytes=budget,
    )
    grid = (n_row, n_h)

    if O == 1:
        w2_row = w2.reshape(1, H)
        if H_pad != H:
            w2_row = jnp.pad(w2_row, ((0, 0), (0, H_pad - H)))
        out = pl.pallas_call(
            _additive_kernel_vec,
            out_shape=jax.ShapeDtypeStruct((1, M_pad), out_dtype),
            grid_spec=pltpu.PrefetchScalarGridSpec(
                num_scalar_prefetch=0,
                grid=grid,
                in_specs=[
                    pl.BlockSpec((tm, D_pad), lambda i, k: (i, 0)),   # row tile of x
                    w1_spec(),                                        # W1^T hidden chunk
                    pl.BlockSpec((1, th), lambda i, k: (0, k)),       # bias chunk
                    pl.BlockSpec((1, th), lambda i, k: (0, k)),       # w2 row chunk
                ],
                out_specs=pl.BlockSpec((1, tm), lambda i, k: (0, i)),  # lane-dense scores
                scratch_shapes=[pltpu.VMEM((tm, 1), jnp.float32)],     # f32 accumulator
            ),
            compiler_params=cparams,
            cost_estimate=cost,
        )(x2d, w1_t, b1_2d, w2_row)
        return out[0, :M].reshape(*lead)          # squeeze(-1) is implicit in the layout

    w2_t = jnp.transpose(w2)                      # (H, O)
    if H_pad != H:
        w2_t = jnp.pad(w2_t, ((0, H_pad - H), (0, 0)))
    out = pl.pallas_call(
        _additive_kernel_mat,
        out_shape=jax.ShapeDtypeStruct((M_pad, O), out_dtype),
        grid_spec=pltpu.PrefetchScalarGridSpec(
            num_scalar_prefetch=0,
            grid=grid,
            in_specs=[
                pl.BlockSpec((tm, D_pad), lambda i, k: (i, 0)),
                w1_spec(),
                pl.BlockSpec((1, th), lambda i, k: (0, k)),
                pl.BlockSpec((th, O), lambda i, k: (k, 0)),
            ],
            out_specs=pl.BlockSpec((tm, O), lambda i, k: (i, 0)),
            scratch_shapes=[pltpu.VMEM((tm, O), jnp.float32)],
        ),
        compiler_params=cparams,
        cost_estimate=cost,
    )(x2d, w1_t, b1_2d, w2_t)
    return out[:M].reshape(*lead, O)


def _reference(tensor_1, w1, b1, w2):
    sim_1 = jnp.einsum("...d,hd->...h", tensor_1, w1) + b1
    sim_2 = jnp.einsum("...h,oh->...o", jnp.tanh(sim_1), w2)
    if w2.shape[0] == 1:
        sim_2 = sim_2[..., 0]
    return sim_2


if __name__ == "__main__":
    # Small shapes consistent with the module's forward.
    batch, seq = 2, 8
    tensor_1_dim = 32
    hidden_size = 32

    key = jax.random.PRNGKey(0)
    k_x, k_w1, k_b1, k_w2, k_w2b = jax.random.split(key, 5)

    x = jax.random.normal(k_x, (batch, seq, tensor_1_dim), dtype=jnp.float32)
    w1 = jax.random.normal(k_w1, (hidden_size, tensor_1_dim), dtype=jnp.float32) * 0.1
    b1 = jax.random.normal(k_b1, (hidden_size,), dtype=jnp.float32) * 0.1

    # output_size == 1 (default module config): VPU multiply + lane-reduce path.
    w2 = jax.random.normal(k_w2, (1, hidden_size), dtype=jnp.float32) * 0.1
    out = jax.block_until_ready(uni_additive_similarity(x, w1, b1, w2))
    ref = _reference(x, w1, b1, w2)
    assert out.shape == (batch, seq), out.shape
    assert jnp.allclose(out, ref, atol=1e-5, rtol=1e-5), float(jnp.max(jnp.abs(out - ref)))

    # output_size > 1: MXU second-matmul path.
    w2b = jax.random.normal(k_w2b, (4, hidden_size), dtype=jnp.float32) * 0.1
    outb = jax.block_until_ready(uni_additive_similarity(x, w1, b1, w2b))
    refb = _reference(x, w1, b1, w2b)
    assert outb.shape == (batch, seq, 4), outb.shape
    assert jnp.allclose(outb, refb, atol=1e-5, rtol=1e-5), float(jnp.max(jnp.abs(outb - refb)))

    print("KERNEL_OK")
</pallas_src>

<mosaic_0001>
module attributes {stable_mosaic.version = 11 : i64} {
  func.func @_additive_kernel_vec(%arg0: i32, %arg1: i32, %arg2: memref<16x128xf32, #tpu.memory_space<vmem>>, %arg3: memref<128x128xf32, #tpu.memory_space<vmem>>, %arg4: memref<1x128xf32, #tpu.memory_space<vmem>>, %arg5: memref<1x128xf32, #tpu.memory_space<vmem>>, %arg6: memref<1x16xf32, #tpu.memory_space<vmem>>, %arg7: memref<16x1xf32, #tpu.memory_space<vmem>>) attributes {dimension_semantics = [#tpu.dimension_semantics<parallel>, #tpu.dimension_semantics<arbitrary>], iteration_bounds = array<i64: 1, 1>, scalar_prefetch = 0 : i64, scratch_operands = 1 : i64, tpu.core_type = #tpu.core_type<tc>, window_params = [{transform_indices = @transform_0, window_bounds = array<i64: 16, 128>}, {transform_indices = @transform_1, window_bounds = array<i64: 128, 128>}, {transform_indices = @transform_2, window_bounds = array<i64: 1, 128>}, {transform_indices = @transform_3, window_bounds = array<i64: 1, 128>}, {transform_indices = @transform_4, window_bounds = array<i64: 1, 16>}]} {
    %c0_i32 = arith.constant 0 : i32
    %0 = arith.cmpi eq, %arg1, %c0_i32 : i32
    %1 = arith.extui %0 : i1 to i32
    %c0_i32_0 = arith.constant 0 : i32
    %2 = arith.cmpi ne, %1, %c0_i32_0 : i32
    scf.if %2 {
      %cst_15 = arith.constant 0.000000e+00 : f32
      %21 = vector.broadcast %cst_15 : f32 to vector<16x1xf32>
      %c0_16 = arith.constant 0 : index
      %c0_17 = arith.constant 0 : index
      %22 = vector.load %arg7[%c0_16, %c0_17] : memref<16x1xf32, #tpu.memory_space<vmem>>, vector<16x1xf32>
      tpu.vector_store %arg7[%c0_16, %c0_17], %21 {strides = array<i32>} : memref<16x1xf32, #tpu.memory_space<vmem>>, vector<16x1xf32>,
    } else {
    }
    %c0 = arith.constant 0 : index
    %c0_1 = arith.constant 0 : index
    %3 = vector.load %arg2[%c0, %c0_1] : memref<16x128xf32, #tpu.memory_space<vmem>>, vector<16x128xf32>
    %c0_2 = arith.constant 0 : index
    %c0_3 = arith.constant 0 : index
    %4 = vector.load %arg3[%c0_2, %c0_3] : memref<128x128xf32, #tpu.memory_space<vmem>>, vector<128x128xf32>
    %cst = arith.constant dense<0.000000e+00> : vector<16x128xf32>
    %5 = tpu.matmul %3, %4, %cst {dimension_numbers = #tpu.dot_dimension_numbers<[1], [0], [0], [1], [0, 0, 1, 1], [], []>} : vector<16x128xf32>, vector<128x128xf32>, vector<16x128xf32> -> vector<16x128xf32>
    %c0_4 = arith.constant 0 : index
    %c0_5 = arith.constant 0 : index
    %6 = vector.load %arg4[%c0_4, %c0_5] : memref<1x128xf32, #tpu.memory_space<vmem>>, vector<1x128xf32>
    %7 = vector.broadcast %6 : vector<1x128xf32> to vector<16x128xf32>
    %8 = arith.addf %5, %7 : vector<16x128xf32>
    %9 = math.tanh %8 : vector<16x128xf32>
    %c0_6 = arith.constant 0 : index
    %c0_7 = arith.constant 0 : index
    %10 = vector.load %arg7[%c0_6, %c0_7] : memref<16x1xf32, #tpu.memory_space<vmem>>, vector<16x1xf32>
    %c0_8 = arith.constant 0 : index
    %c0_9 = arith.constant 0 : index
    %11 = vector.load %arg5[%c0_8, %c0_9] : memref<1x128xf32, #tpu.memory_space<vmem>>, vector<1x128xf32>
    %12 = vector.broadcast %11 : vector<1x128xf32> to vector<16x128xf32>
    %13 = arith.mulf %9, %12 : vector<16x128xf32>
    %cst_10 = arith.constant dense<0.000000e+00> : vector<16xf32>
    %14 = vector.multi_reduction <add>, %13, %cst_10 [1] : vector<16x128xf32> to vector<16xf32>
    %15 = vector.shape_cast %14 : vector<16xf32> to vector<16x1xf32>
    %16 = arith.addf %10, %15 : vector<16x1xf32>
    %c0_11 = arith.constant 0 : index
    %c0_12 = arith.constant 0 : index
    %17 = vector.load %arg7[%c0_11, %c0_12] : memref<16x1xf32, #tpu.memory_space<vmem>>, vector<16x1xf32>
    tpu.vector_store %arg7[%c0_11, %c0_12], %16 {strides = array<i32>} : memref<16x1xf32, #tpu.memory_space<vmem>>, vector<16x1xf32>,
    %c0_i32_13 = arith.constant 0 : i32
    %18 = arith.cmpi eq, %arg1, %c0_i32_13 : i32
    %19 = arith.extui %18 : i1 to i32
    %c0_i32_14 = arith.constant 0 : i32
    %20 = arith.cmpi ne, %19, %c0_i32_14 : i32
    scf.if %20 {
      %c0_15 = arith.constant 0 : index
      %c0_16 = arith.constant 0 : index
      %21 = vector.load %arg7[%c0_15, %c0_16] : memref<16x1xf32, #tpu.memory_space<vmem>>, vector<16x1xf32>
      %22 = tpu.transpose %21, [1, 0] : vector<16x1xf32> -> vector<1x16xf32>
      %c0_17 = arith.constant 0 : index
      %c0_18 = arith.constant 0 : index
      %23 = vector.load %arg6[%c0_17, %c0_18] : memref<1x16xf32, #tpu.memory_space<vmem>>, vector<1x16xf32>
      tpu.vector_store %arg6[%c0_17, %c0_18], %22 {strides = array<i32>} : memref<1x16xf32, #tpu.memory_space<vmem>>, vector<1x16xf32>,
    } else {
    }
    return
  }
  func.func @transform_0(%arg0: i32, %arg1: i32) -> (i32, i32) {
    %c0_i32 = arith.constant 0 : i32
    %c0_i32_0 = arith.constant 0 : i32
    return %arg0, %c0_i32 : i32, i32
  }
  func.func @transform_1(%arg0: i32, %arg1: i32) -> (i32, i32) {
    %c0_i32 = arith.constant 0 : i32
    %c0_i32_0 = arith.constant 0 : i32
    return %c0_i32, %arg1 : i32, i32
  }
  func.func @transform_2(%arg0: i32, %arg1: i32) -> (i32, i32) {
    %c0_i32 = arith.constant 0 : i32
    %c0_i32_0 = arith.constant 0 : i32
    return %c0_i32, %arg1 : i32, i32
  }
  func.func @transform_3(%arg0: i32, %arg1: i32) -> (i32, i32) {
    %c0_i32 = arith.constant 0 : i32
    %c0_i32_0 = arith.constant 0 : i32
    return %c0_i32, %arg1 : i32, i32
  }
  func.func @transform_4(%arg0: i32, %arg1: i32) -> (i32, i32) {
    %c0_i32 = arith.constant 0 : i32
    %c0_i32_0 = arith.constant 0 : i32
    return %c0_i32, %arg0 : i32, i32
  }
}

</mosaic_0001>

<bundles_post_ra>
// kernel: tpu_custom_call.1
= control target key start
LH: loop header
LB: loop body
LE: loop exit
PB: predicated region body
PF: predicated region fallthrough
CT: control target
= control target key end

     0   :  { %9 = vsyncpa [#allocation4], 0  ;;  %s411_s0 = inlined_call_operand.hbm [shape: f32[16,128], index: 0, kind: input, shape index: {}]   ;;  %s412_s1 = inlined_call_operand.hbm [shape: f32[128,128], index: 1, kind: input, shape index: {}]   ;;  %s413_s2 = inlined_call_operand.vmem [shape: f32[1,128], index: 2, kind: input, shape index: {}]   ;;  %s414_s3 = inlined_call_operand.vmem [shape: f32[1,128], index: 3, kind: input, shape index: {}]   ;;  %s415_s4 = inlined_call_operand.hbm [shape: f32[1,16], index: 4, kind: output, shape index: {}]  }
   0x1   :  { %10 = vsyncpa [#allocation7], 0 }
   0x2   :  { %11 = vsyncpa [#allocation5], 0  ;;  %s361_s15 = smov [#allocation3]  }
   0x3   :  { %s17_s16 = sshll.u32 %s361_s15, 4  ;;  %s18_s16 = int_to_ptr.vmem [resolvable:$true] %s17_s16 }
   0x4   :  { %s303_s17 = scalar_lea.vmem %s18_s16, 256  ;;  %p308_p1 = scmp.lt.s32.totalorder %s18_s16, %s18_s16 }
   0x5   :  { %p304_p0 = scmp.ne.s32.totalorder %s18_s16, %s303_s17  ;;  %p309_p2 = scmp.lt.s32.totalorder %s303_s17, %s303_s17 }
   0x7   :  { %p310_p3 = por %p309_p2, %p308_p1 }
   0x9   :  { %p311_p4 = pnand %p310_p3, %p304_p0 }
   0xb   :  { %314 = shalt.err (!%p311_p4)
}
   0xc   :  { %s362_s18 = smov 128   ;;  %s363_s19 = smov 8  }
   0xd   :  { %23 = dma.hbm_to_vmem [thread:$0]  %s411_s0, 256, %s18_s16, [#allocation4], %s362_s18, %s362_s18, %s363_s19  }
   0xe   :  { %s364_s22 = smov [#allocation6]  }
   0xf   :  { %s29_s23 = sshll.u32 %s364_s22, 4  ;;  %s30_s23 = int_to_ptr.vmem [resolvable:$true] %s29_s23 }
  0x10   :  { %s323_s24 = scalar_lea.vmem %s30_s23, 2048  ;;  %p328_p6 = scmp.lt.s32.totalorder %s30_s23, %s30_s23 }
  0x11   :  { %p324_p5 = scmp.ne.s32.totalorder %s30_s23, %s323_s24  ;;  %p329_p7 = scmp.lt.s32.totalorder %s323_s24, %s323_s24 }
  0x13   :  { %p330_p8 = por %p329_p7, %p328_p6 }
  0x15   :  { %p331_p9 = pnand %p330_p8, %p324_p5 }
  0x17   :  { %334 = shalt.err (!%p331_p9)
}
  0x18   :  { %35 = dma.hbm_to_vmem [thread:$0]  %s412_s1, 2048, %s30_s23, [#allocation7], %s362_s18, %s362_s18, %s363_s19  }
  0x19   :  { %355 = dma.done.wait [#allocation4], 256  }
  0x1a   :  { %356 = vsyncadd [#allocation4], 4294967040 }
  0x1b   :  { %357 = dma.done.wait [#allocation7], 2048  }
  0x1c   :  { %358 = vsyncadd [#allocation7], 4294965248  ;;  %v70_v0 = vld [vmem:[#allocation6 + $0x78] sm:$0xff]  ;;  %v69_v1 = vld [vmem:[#allocation6 + $0x70] sm:$0xff]  ;;  %vm50_vm0 = vcmask 7168   ;;  %v365_v18 = vmov 0.0  }
  0x1d   :  { %250 = vmatprep.subr.mxu0 %v70_v0  ;;  %v68_v2 = vld [vmem:[#allocation6 + $0x68] sm:$0xff]  ;;  %v67_v3 = vld [vmem:[#allocation6 + $0x60] sm:$0xff]  ;;  %v53_v4 = vld [vmem:[#allocation3] sm:$0xff]  ;;  %51 = vst.msk [vmem:[#allocation2] sm:$0xff] %vm50_vm0, %v365_v18  ;;  %vm212_vm1 = vcmask 122880  }
  0x1e   :  { %251 = vmatpush3.msra.mxu0 %v70_v0  ;;  %v66_v5 = vld [vmem:[#allocation6 + $0x58] sm:$0xff]  ;;  %282 = vmatprep.mubr.f32.mxu0 %v53_v4  ;;  %v65_v6 = vld [vmem:[#allocation6 + $0x50] sm:$0xff]  ;;  %v64_v7 = vld [vmem:[#allocation6 + $0x48] sm:$0xff]  ;;  %52 = vst.msk [vmem:[#allocation2 + $0x8] sm:$0xff] %vm50_vm0, %v365_v18 }
  0x1f   :  { %252 = vmatprep.subr.mxu0 %v69_v1  ;;  %v63_v8 = vld [vmem:[#allocation6 + $0x40] sm:$0xff]  ;;  %v62_v9 = vld [vmem:[#allocation6 + $0x38] sm:$0xff]  ;;  %v61_v10 = vld [vmem:[#allocation6 + $0x30] sm:$0xff] }
  0x20   :  { %253 = vmatpush3.msra.mxu0 %v69_v1  ;;  %v60_v11 = vld [vmem:[#allocation6 + $0x28] sm:$0xff]  ;;  %v59_v12 = vld [vmem:[#allocation6 + $0x20] sm:$0xff]  ;;  %v58_v13 = vld [vmem:[#allocation6 + $0x18] sm:$0xff] }
  0x21   :  { %254 = vmatprep.subr.mxu0 %v68_v2  ;;  %v57_v14 = vld [vmem:[#allocation6 + $0x10] sm:$0xff]  ;;  %v56_v15 = vld [vmem:[#allocation6 + $0x8] sm:$0xff]  ;;  %v55_v16 = vld [vmem:[#allocation6] sm:$0xff] }
  0x22   :  { %255 = vmatpush3.msra.mxu0 %v68_v2  ;;  %v54_v17 = vld [vmem:[#allocation3 + $0x8] sm:$0xff]  ;;  %v230_v20 = vld [vmem:[%s413_s2] ss:$0 sm:$0xff]  ;;  %s366_s2 = smov [#allocation8]  }
  0x23   :  { %256 = vmatprep.subr.mxu0 %v67_v3  ;;  %v231_v25 = vld [vmem:[%s414_s3] ss:$0 sm:$0xff]  ;;  %s220_s3 = sshll.u32 %s366_s2, 4  ;;  %s221_s3 = int_to_ptr.vmem [resolvable:$true] %s220_s3 }
  0x24   :  { %257 = vmatpush3.msra.mxu0 %v67_v3  ;;  %v155_v29 = vld [vmem:[#allocation2] sm:$0xff]  ;;  %s335_s29 = scalar_lea.vmem %s221_s3, 16  ;;  %s339_s30 = scalar_lea.vmem %s221_s3, 32 }
  0x25   :  { %258 = vmatprep.subr.mxu0 %v66_v5  ;;  %v156_v32 = vld [vmem:[#allocation2 + $0x8] sm:$0xff]  ;;  %p336_p10 = scmp.ne.s32.totalorder %s221_s3, %s335_s29  ;;  %p340_p11 = scmp.lt.s32.totalorder %s221_s3, %s221_s3 }
  0x26   :  { %259 = vmatpush3.msra.mxu0 %v66_v5  ;;  %p341_p12 = scmp.lt.s32.totalorder %s339_s30, %s335_s29 }
  0x27   :  { %260 = vmatprep.subr.mxu0 %v65_v6 }
  0x28   :  { %261 = vmatpush3.msra.mxu0 %v65_v6  ;;  %p342_p13 = por %p341_p12, %p340_p11 }
  0x29   :  { %262 = vmatprep.subr.mxu0 %v64_v7 }
  0x2a   :  { %263 = vmatpush3.msra.mxu0 %v64_v7  ;;  %p343_p0 = pnand %p342_p13, %p336_p10 }
  0x2b   :  { %264 = vmatprep.subr.mxu0 %v63_v8 }
  0x2c   :  { %265 = vmatpush3.msra.mxu0 %v63_v8 }
  0x2d   :  { %266 = vmatprep.subr.mxu0 %v62_v9 }
  0x2e   :  { %267 = vmatpush3.msra.mxu0 %v62_v9 }
  0x2f   :  { %268 = vmatprep.subr.mxu0 %v61_v10 }
  0x30   :  { %269 = vmatpush3.msra.mxu0 %v61_v10 }
  0x31   :  { %270 = vmatprep.subr.mxu0 %v60_v11 }
  0x32   :  { %271 = vmatpush3.msra.mxu0 %v60_v11 }
  0x33   :  { %272 = vmatprep.subr.mxu0 %v59_v12 }
  0x34   :  { %273 = vmatpush3.msra.mxu0 %v59_v12 }
  0x35   :  { %274 = vmatprep.subr.mxu0 %v58_v13 }
  0x36   :  { %275 = vmatpush3.msra.mxu0 %v58_v13 }
  0x37   :  { %276 = vmatprep.subr.mxu0 %v57_v14 }
  0x38   :  { %277 = vmatpush3.msra.mxu0 %v57_v14 }
  0x39   :  { %278 = vmatprep.subr.mxu0 %v56_v15 }
  0x3a   :  { %279 = vmatpush3.msra.mxu0 %v56_v15 }
  0x3b   :  { %280 = vmatprep.subr.mxu0 %v55_v16 }
  0x3c   :  { %281 = vmatpush3.msra.mxu0 %v55_v16 }
  0x3d   :  { %283 = vmatmul.mubr.f32.vlgmr.msra.gmra.mxu0 %v54_v17 }
  0xfd   :  { %v284_v19 = vpop.f32.mrf.mxu0 }
  0xfe   :  { %v150_v22 = vadd.f32 %v284_v19, %v230_v20 }
  0xff   :  { %v144_v21 = vpop.f32.mrf.mxu0 }
 0x100   :  { %v145_v23 = vadd.f32 %v230_v20, %v144_v21 }
 0x102   :  { %291 = vtanh.f32 %v145_v23 }
 0x103   :  { %293 = vtanh.f32 %v150_v22 }
 0x10f   :  { %v292_v24 = vpop.eup %291 }
 0x110   :  { %v164_v26 = vmul.f32 %v292_v24, %v231_v25  ;;  %v294_v27 = vpop.eup %293 }
 0x111   :  { %v165_v28 = vmul.f32 %v294_v27, %v231_v25 }
 0x112   :  { %166 = vadd.xlane.f32.xlu0 %v164_v26 }
 0x116   :  { %168 = vadd.xlane.f32.xlu0 %v165_v28 }
 0x19b   :  { %v167_v30 = vpop.xlane.xlu0 %166 }
 0x19c   :  { %v170_v31 = vadd.f32 %v167_v30, %v155_v29 }
 0x19e   :  { %173 = vst.msk [vmem:[#allocation2] sm:$0xff] %vm50_vm0, %v170_v31 }
 0x19f   :  { %v169_v33 = vpop.xlane.xlu0 %168 }
 0x1a0   :  { %v171_v34 = vadd.f32 %v169_v33, %v156_v32 }
 0x1a2   :  { %174 = vst.msk [vmem:[#allocation2 + $0x8] sm:$0xff] %vm50_vm0, %v171_v34 }
 0x1a5   :  { %v178_v35 = vld [vmem:[#allocation2] sm:$0xff] }
 0x1a6   :  { %180 = vxpose.xlu1.b32.start [1/2] (short) (narrow) %v178_v35, 8 }
 0x1a9   :  { %v179_v36 = vld [vmem:[#allocation2 + $0x8] sm:$0xff] }
 0x1aa   :  { %181 = vxpose.xlu1.b32.end [2/2] (short) (narrow) %v179_v36, 8 }
 0x222   :  { %v196_v37 = vpop.trf.xlu1 }
 0x223   :  { %213 = vst.msk [vmem:[#allocation8] sm:$0x1] %vm212_vm1, %v196_v37 }
 0x224   :  { %346 = shalt.err (!%p343_p0)
}
 0x225   :  { %223 = dma.vmem_to_hbm [thread:$0]  %s221_s3, 16, %s415_s4, [#allocation5]  }
 0x226   :  { %359 = dma.done.wait [#allocation5], 16  }
 0x227   :  { %360 = vsyncadd [#allocation5], 4294967280 }
 0x228   :  { %227 = vsyncpa [#allocation4], 1 }
 0x229   :  { %228 = vsyncpa [#allocation7], 1 }
 0x22a   :  { %229 = vsyncpa [#allocation5], 1 }

</bundles_post_ra>
